<compile_context>
chip_gen: v6e
topology: v6e:2x2x1
jax: 0.10.0
libtpu: 0.0.40
codegen_flags: <defaults>
</compile_context>

<pallas_src>
import jax
import jax.numpy as jnp
from jax.experimental import pallas as pl
from jax.experimental.pallas import tpu as pltpu


def _transpose_kernel(x_ref, o_ref):
    # x_ref block: (tT, tD); o_ref block: (tD, tT) -- pure 2-D XLU transpose.
    o_ref[...] = jnp.transpose(x_ref[...], (1, 0))


def _transpose_last2(x: jax.Array) -> jax.Array:
    """(B, T, D) -> (B, D, T) via a tiled Pallas transpose."""
    B, T, D = x.shape
    itemsize = jnp.dtype(x.dtype).itemsize
    cap = 1024 if itemsize <= 2 else 512  # per-dtype tile-edge cap

    # Pad a dim up to one lane tile only when it is smaller than 128; larger
    # unaligned dims are handled with cdiv partial edge blocks (masked edge
    # stores) instead of a full pad + slice HBM round trip.
    Tp = 128 if T < 128 else T
    Dp = 128 if D < 128 else D
    xp = x
    if (Tp, Dp) != (T, D):
        xp = jnp.pad(x, ((0, 0), (0, Tp - T), (0, Dp - D)))

    # Tile edges are multiples of 128 -> aligned blocks, lane-dense stores for
    # all interior tiles, and a well-supported (128-multiple) block transpose.
    tT = min(cap, (Tp // 128) * 128)
    tD = min(cap, (Dp // 128) * 128)

    grid = (B, pl.cdiv(Tp, tT), pl.cdiv(Dp, tD))

    tile_bytes = tT * tD * itemsize
    # Double-buffered input + output blocks ~= 4 * tile_bytes; give headroom
    # but stay under v7x's 64 MiB physical VMEM.
    vmem_limit = int(min(64 * 2**20, max(16 * 2**20, 8 * tile_bytes)))

    out = pl.pallas_call(
        _transpose_kernel,
        out_shape=jax.ShapeDtypeStruct((B, Dp, Tp), x.dtype),
        grid_spec=pltpu.PrefetchScalarGridSpec(
            num_scalar_prefetch=0,
            grid=grid,
            in_specs=[
                pl.BlockSpec((None, tT, tD), lambda b, i, j: (b, i, j)),
            ],
            out_specs=pl.BlockSpec((None, tD, tT), lambda b, i, j: (b, j, i)),
        ),
        compiler_params=pltpu.CompilerParams(
            dimension_semantics=("parallel", "parallel", "parallel"),
            vmem_limit_bytes=vmem_limit,
        ),
    )(xp)

    if (Tp, Dp) != (T, D):
        out = out[:, :D, :T]
    return out


def transpose_pallas(x: jax.Array, shape: tuple = (1, 2)) -> jax.Array:
    """Equivalent of torch Transpose(shape).forward(x) == x.transpose(*shape)."""
    nd = x.ndim
    d0, d1 = shape
    d0, d1 = d0 % nd, d1 % nd
    if d0 == d1:
        return x

    if nd < 2 or {d0, d1} != {nd - 2, nd - 1}:
        # TODO(synk): only swaps of the last two axes go through the Pallas
        # path (the conformer use case); other dim pairs are plain layout
        # permutes left to XLA.
        perm = list(range(nd))
        perm[d0], perm[d1] = perm[d1], perm[d0]
        return jnp.transpose(x, perm)

    lead = x.shape[:-2]
    T, D = x.shape[-2], x.shape[-1]
    B = 1
    for s in lead:
        B *= s
    out3 = _transpose_last2(x.reshape(B, T, D))
    return out3.reshape(*lead, D, T)


if __name__ == "__main__":
    key = jax.random.PRNGKey(0)
    k1, k2, k3 = jax.random.split(key, 3)

    # 1) Small conformer-like shape (batch=2, seq=8, hidden=32): sub-128 dims
    #    go through the pad-to-one-lane-tile path.
    x1 = jax.random.normal(k1, (2, 8, 32), dtype=jnp.float32)
    y1 = jax.block_until_ready(transpose_pallas(x1, shape=(1, 2)))
    assert y1.shape == (2, 32, 8), y1.shape
    assert jnp.array_equal(y1, jnp.swapaxes(x1, 1, 2)), "mismatch (padded path)"

    # 2) Lane-aligned shape exercising the tiled grid path.
    x2 = jax.random.normal(k2, (2, 384, 256), dtype=jnp.float32)
    y2 = jax.block_until_ready(transpose_pallas(x2, shape=(1, 2)))
    assert y2.shape == (2, 256, 384), y2.shape
    assert jnp.array_equal(y2, jnp.swapaxes(x2, 1, 2)), "mismatch (tiled path)"

    # 3) Unaligned seq length (>=128, not a multiple of 128): partial edge
    #    blocks, no pad/slice HBM round trip.
    x3 = jax.random.normal(k3, (2, 200, 256), dtype=jnp.float32)
    y3 = jax.block_until_ready(transpose_pallas(x3, shape=(1, 2)))
    assert y3.shape == (2, 256, 200), y3.shape
    assert jnp.array_equal(y3, jnp.swapaxes(x3, 1, 2)), "mismatch (ragged path)"

    print("KERNEL_OK")
</pallas_src>

<mosaic_0001>
module attributes {stable_mosaic.version = 11 : i64} {
  func.func @_transpose_kernel(%arg0: i32, %arg1: i32, %arg2: i32, %arg3: memref<1x128x128xf32, #tpu.memory_space<vmem>>, %arg4: memref<1x128x128xf32, #tpu.memory_space<vmem>>) attributes {dimension_semantics = [#tpu.dimension_semantics<parallel>, #tpu.dimension_semantics<parallel>, #tpu.dimension_semantics<parallel>], iteration_bounds = array<i64: 2, 1, 1>, scalar_prefetch = 0 : i64, scratch_operands = 0 : i64, tpu.core_type = #tpu.core_type<tc>, window_params = [{transform_indices = @transform_0, window_bounds = array<i64: 1, 128, 128>}, {transform_indices = @transform_1, window_bounds = array<i64: 1, 128, 128>}]} {
    %c0 = arith.constant 0 : index
    %c0_0 = arith.constant 0 : index
    %c0_1 = arith.constant 0 : index
    %0 = vector.load %arg3[%c0, %c0_0, %c0_1] : memref<1x128x128xf32, #tpu.memory_space<vmem>>, vector<1x128x128xf32>
    %1 = vector.shape_cast %0 : vector<1x128x128xf32> to vector<128x128xf32>
    %2 = tpu.transpose %1, [1, 0] : vector<128x128xf32> -> vector<128x128xf32>
    %c0_2 = arith.constant 0 : index
    %c0_3 = arith.constant 0 : index
    %c0_4 = arith.constant 0 : index
    %3 = vector.load %arg4[%c0_2, %c0_3, %c0_4] : memref<1x128x128xf32, #tpu.memory_space<vmem>>, vector<1x128x128xf32>
    %4 = vector.shape_cast %3 : vector<1x128x128xf32> to vector<128x128xf32>
    %5 = vector.shape_cast %2 : vector<128x128xf32> to vector<1x128x128xf32>
    tpu.vector_store %arg4[%c0_2, %c0_3, %c0_4], %5 {strides = array<i32>} : memref<1x128x128xf32, #tpu.memory_space<vmem>>, vector<1x128x128xf32>,
    return
  }
  func.func @transform_0(%arg0: i32, %arg1: i32, %arg2: i32) -> (i32, i32, i32) {
    %c0_i32 = arith.constant 0 : i32
    return %arg0, %arg1, %arg2 : i32, i32, i32
  }
  func.func @transform_1(%arg0: i32, %arg1: i32, %arg2: i32) -> (i32, i32, i32) {
    %c0_i32 = arith.constant 0 : i32
    return %arg0, %arg2, %arg1 : i32, i32, i32
  }
}

</mosaic_0001>

<bundles_post_ra>
// kernel: tpu_custom_call.1
= control target key start
LH: loop header
LB: loop body
LE: loop exit
PB: predicated region body
PF: predicated region fallthrough
CT: control target
= control target key end

     0   :  { %6 = vsyncpa [#allocation3], 0  ;;  %s736_s0 = inlined_call_operand.hbm [shape: f32[2,128,128], index: 0, kind: input, shape index: {}]   ;;  %s737_s1 = inlined_call_operand.hbm [shape: f32[2,128,128], index: 1, kind: output, shape index: {}]  }
   0x1   :  { %8 = vsyncpa [#allocation3 + $0x1], 0 }
   0x2   :  { %9 = vsyncpa [#allocation4], 0 }
   0x3   :  { %11 = vsyncpa [#allocation4 + $0x1], 0  ;;  %s549_s6 = smov 0   ;;  %s551_s7 = smov 0  }
   0x4   :  { %s553_s8 = smov 0   ;;  %s555_s9 = smov 0  }
   0x5   :  { %s557_s10 = smov 0   ;;  %s559_s11 = smov 0  }
   0x6 LB: > { %s340_s12 = sadd.s32 4294967295, %s531_s11   ;;  %s341_s13 = sadd.s32 4294967294, %s531_s11   ;;  %s531_s11 = sphi %s559_s11, %s17_s11   ;;  %s527_s10 = sphi %s557_s10, %s748_s10   ;;  %s523_s9 = sphi %s555_s9, %s747_s9   ;;  %s519_s8 = sphi %s553_s8, %s746_s8   ;;  %s515_s7 = sphi %s551_s7, %s745_s7   ;;  %s511_s6 = sphi %s549_s6, %s744_s6  }
   0x7   : > { %s36_s14 = sadd.s32 1, %s527_s10  ;;  %s47_s15 = sadd.s32 1, %s519_s8 }
   0x8   : > { %p38_p0 = scmp.ge.s32.totalorder %s36_s14, 2  ;;  %p54_p1 = scmp.ne.s32.totalorder %s519_s8, %s515_s7 }
   0x9   : > { %p55_p2 = scmp.eq.s32.totalorder %s531_s11, 0  ;;  %p60_p3 = scmp.ne.s32.totalorder %s515_s7, %s511_s6 }
   0xa   : > { %s750_s14 = smov (%p38_p0, %s36_s14), 0  ;;  %p61_p5 = scmp.eq.s32.totalorder %s340_s12, 0 }
   0xb   : > { %p590_p4 = por %p55_p2, %p54_p1  ;;  %s40_s17 = ssub.s32 %s527_s10, %s750_s14 }
   0xc   : > { %p88_p6 = scmp.eq.s32.totalorder %s340_s12, 1  ;;  %p45_p7 = scmp.eq.s32.totalorder %s40_s17, 0 }
   0xd   : > { %p596_p8 = por %p61_p5, %p60_p3  ;;  %p94_p10 = scmp.eq.s32.totalorder %s341_s13, 1 }
   0xe   : > { %p600_p9 = por %p88_p6, %p54_p1  ;;  %p369_p13 = scmp.lt.s32.totalorder %s531_s11, 2 }
   0xf   : > { %s605_s20 = scalar_select %p45_p7, %s519_s8, %s47_s15  }
  0x10   : > { %p607_p11 = por %p94_p10, %p60_p3  ;;  %s114_s22 = sand.u32 1, %s519_s8  }
  0x11   : > { %s344_s23 = sshll.u32 %s114_s22, 7  ;;  %s355_s24 = sshll.u32 %s527_s10, 11 }
  0x12   : > { %s127_s27 = scalar_lea.hbm %s736_s0, %s355_s24  ;;  %s118_s28 = scalar_lea.vmem [#allocation2], %s344_s23 }
  0x13   : > { %s128_s29 = sshll.u32 %s118_s28, 4  ;;  %p620_p0 = pnand %p369_p13, %p590_p4  ;;  %s129_s29 = int_to_ptr.vmem [resolvable:$true] %s128_s29 }
  0x14   : > { %p347_p1 = scmp.ge.s32.totalorder %s531_s11, 1  ;;  %s115_s2 = scalar_lea.sflag [#allocation3], %s114_s22 }
  0x15   : > { %p425_p2 = pneg %p620_p0  ;;  %s436_s3 = scalar_lea.vmem %s129_s29, 2048 }
  0x16   : > { %p437_p3 = scmp.ne.s32.totalorder %s129_s29, %s436_s3  ;;  %s533_s4 = smov [#allocation2]  }
  0x17   : > { %s441_s5 = sshll.u32 %s533_s4, 4  ;;  %s442_s5 = int_to_ptr.vmem [resolvable:$false] %s441_s5 }
  0x18   : > { %p439_p5 = pnand %p437_p3, %p425_p2  ;;  %s443_s12 = scalar_lea.vmem %s442_s5, 4096 }
  0x19   : > { %p444_p7 = scmp.lt.s32.totalorder %s129_s29, %s442_s5  ;;  %p445_p10 = scmp.lt.s32.totalorder %s443_s12, %s436_s3 }
  0x1a   : > { %p440_p6 = pneg %p439_p5 }
  0x1b   : > { %p446_p12 = por %p445_p10, %p444_p7 }
  0x1d   : > { %p447_p4 = pnand %p446_p12, %p440_p6 }
  0x1f   : > { %450 = shalt.err (!%p447_p4)
}
  0x20   : > { %s534_s13 = smov 128   ;;  %s535_s15 = smov 8  }
  0x21   : > { %364 = dma.hbm_to_vmem [thread:$0]  (!%p620_p0), %s127_s27, 2048, %s129_s29, %s115_s2, %s534_s13, %s534_s13, %s535_s15  }
  0x22   : > { %p136_p13 = scmp.lt.s32.totalorder %s531_s11, 3 }
  0x24   : > { %p137_p2 = pnand %p347_p1, %p136_p13 }
  0x25   : > { %s633_s16 = sand.u32 (!%p137_p2), 1, %s515_s7  }
  0x26   : > { %140 = sbr.rel (%p137_p2) target bundleno = 244 (0xf4), region = 24  ;;  %s348_s17 = sshll.u32 (!%p137_p2), %s633_s16, 7 }
  0x27   : > { %s143_s22 = scalar_lea.sflag (!%p137_p2), [#allocation3], %s633_s16  ;;  %s639_s23 = scalar_lea.vmem (!%p137_p2), [#allocation2], %s348_s17 }
  0x2b   : > { %502 = dma.done.wait (%p596_p8), %s143_s22, 2048  }
  0x2c   : > { %504 = vsyncadd (%p596_p8), %s143_s22, 4294965248  ;;  %v167_v0 = vld [vmem:[%s639_s23] sm:$0xff]  ;;  %v168_v1 = vld [vmem:[%s639_s23 + $0x8] sm:$0xff]  ;;  %s663_s18 = scalar_lea.vmem [#allocation5], %s348_s17  ;;  %s356_s24 = sshll.u32 %s523_s9, 11 }
  0x2d   : > { %183 = vxpose.xlu0.b32.start [1/16] %v167_v0, 128  ;;  %v169_v2 = vld [vmem:[%s639_s23 + $0x10] sm:$0xff]  ;;  %v170_v3 = vld [vmem:[%s639_s23 + $0x18] sm:$0xff]  ;;  %v171_v4 = vld [vmem:[%s639_s23 + $0x20] sm:$0xff]  ;;  %s248_s25 = sshll.u32 %s663_s18, 4  ;;  %s685_s28 = scalar_lea.hbm %s737_s1, %s356_s24  ;;  %s687_s25 = int_to_ptr.vmem [resolvable:$true] %s248_s25 }
  0x2e   : > { %v172_v5 = vld [vmem:[%s639_s23 + $0x28] sm:$0xff]  ;;  %v173_v6 = vld [vmem:[%s639_s23 + $0x30] sm:$0xff]  ;;  %v174_v7 = vld [vmem:[%s639_s23 + $0x38] sm:$0xff]  ;;  %s232_s29 = scalar_lea.sflag [#allocation4], %s633_s16  ;;  %s451_s30 = scalar_lea.vmem %s687_s25, 2048 }
  0x2f   : > { %v175_v8 = vld [vmem:[%s639_s23 + $0x40] sm:$0xff]  ;;  %v176_v9 = vld [vmem:[%s639_s23 + $0x48] sm:$0xff]  ;;  %v177_v10 = vld [vmem:[%s639_s23 + $0x50] sm:$0xff]  ;;  %p452_p8 = scmp.ne.s32.totalorder %s687_s25, %s451_s30  ;;  %s536_s9 = smov [#allocation5]  }
  0x30   : > { %v178_v11 = vld [vmem:[%s639_s23 + $0x58] sm:$0xff]  ;;  %v179_v12 = vld [vmem:[%s639_s23 + $0x60] sm:$0xff]  ;;  %v180_v13 = vld [vmem:[%s639_s23 + $0x68] sm:$0xff]  ;;  %s455_s2 = sshll.u32 %s536_s9, 4  ;;  %s456_s2 = int_to_ptr.vmem [resolvable:$false] %s455_s2 }
  0x31   : > { %184 = vxpose.xlu0.b32.cont [2/16] %v168_v1, 128  ;;  %v181_v14 = vld [vmem:[%s639_s23 + $0x70] sm:$0xff]  ;;  %v182_v15 = vld [vmem:[%s639_s23 + $0x78] sm:$0xff]  ;;  %p453_p12 = pnand %p452_p8, %p600_p9  ;;  %s457_s3 = scalar_lea.vmem %s456_s2, 4096 }
  0x32   : > { %p458_p1 = scmp.lt.s32.totalorder %s687_s25, %s456_s2  ;;  %p459_p3 = scmp.lt.s32.totalorder %s457_s3, %s451_s30 }
  0x33   : > { %p454_p0 = pneg %p453_p12 }
  0x34   : > { %p460_p5 = por %p459_p3, %p458_p1 }
  0x35   : > { %185 = vxpose.xlu0.b32.cont [3/16] %v169_v2, 128 }
  0x36   : > { %p461_p6 = pnand %p460_p5, %p454_p0 }
  0x39   : > { %186 = vxpose.xlu0.b32.cont [4/16] %v170_v3, 128 }
  0x3d   : > { %187 = vxpose.xlu0.b32.cont [5/16] %v171_v4, 128 }
  0x41   : > { %188 = vxpose.xlu0.b32.cont [6/16] %v172_v5, 128 }
  0x45   : > { %189 = vxpose.xlu0.b32.cont [7/16] %v173_v6, 128 }
  0x49   : > { %190 = vxpose.xlu0.b32.cont [8/16] %v174_v7, 128 }
  0x4d   : > { %191 = vxpose.xlu0.b32.cont [9/16] %v175_v8, 128 }
  0x51   : > { %192 = vxpose.xlu0.b32.cont [10/16] %v176_v9, 128 }
  0x55   : > { %193 = vxpose.xlu0.b32.cont [11/16] %v177_v10, 128 }
  0x59   : > { %194 = vxpose.xlu0.b32.cont [12/16] %v178_v11, 128 }
  0x5d   : > { %195 = vxpose.xlu0.b32.cont [13/16] %v179_v12, 128 }
  0x61   : > { %196 = vxpose.xlu0.b32.cont [14/16] %v180_v13, 128 }
  0x65   : > { %197 = vxpose.xlu0.b32.cont [15/16] %v181_v14, 128 }
  0x69   : > { %198 = vxpose.xlu0.b32.end [16/16] %v182_v15, 128 }
  0xa9   : > { %v199_v16 = vpop.trf.xlu0 }
  0xaa   : > { %215 = vst [vmem:[%s663_s18] sm:$0xff] %v199_v16 }
  0xad   : > { %v200_v17 = vpop.trf.xlu0 }
  0xae   : > { %216 = vst [vmem:[%s663_s18 + $0x8] sm:$0xff] %v200_v17 }
  0xb1   : > { %v201_v18 = vpop.trf.xlu0 }
  0xb2   : > { %217 = vst [vmem:[%s663_s18 + $0x10] sm:$0xff] %v201_v18 }
  0xb5   : > { %v202_v19 = vpop.trf.xlu0 }
  0xb6   : > { %218 = vst [vmem:[%s663_s18 + $0x18] sm:$0xff] %v202_v19 }
  0xb9   : > { %v203_v20 = vpop.trf.xlu0 }
  0xba   : > { %219 = vst [vmem:[%s663_s18 + $0x20] sm:$0xff] %v203_v20 }
  0xbd   : > { %v204_v21 = vpop.trf.xlu0 }
  0xbe   : > { %220 = vst [vmem:[%s663_s18 + $0x28] sm:$0xff] %v204_v21 }
  0xc1   : > { %v205_v22 = vpop.trf.xlu0 }
  0xc2   : > { %221 = vst [vmem:[%s663_s18 + $0x30] sm:$0xff] %v205_v22 }
  0xc5   : > { %v206_v23 = vpop.trf.xlu0 }
  0xc6   : > { %222 = vst [vmem:[%s663_s18 + $0x38] sm:$0xff] %v206_v23 }
  0xc9   : > { %v207_v24 = vpop.trf.xlu0 }
  0xca   : > { %223 = vst [vmem:[%s663_s18 + $0x40] sm:$0xff] %v207_v24 }
  0xcd   : > { %v208_v25 = vpop.trf.xlu0 }
  0xce   : > { %224 = vst [vmem:[%s663_s18 + $0x48] sm:$0xff] %v208_v25 }
  0xd1   : > { %v209_v26 = vpop.trf.xlu0 }
  0xd2   : > { %225 = vst [vmem:[%s663_s18 + $0x50] sm:$0xff] %v209_v26 }
  0xd5   : > { %v210_v27 = vpop.trf.xlu0 }
  0xd6   : > { %226 = vst [vmem:[%s663_s18 + $0x58] sm:$0xff] %v210_v27 }
  0xd9   : > { %v211_v28 = vpop.trf.xlu0 }
  0xda   : > { %227 = vst [vmem:[%s663_s18 + $0x60] sm:$0xff] %v211_v28 }
  0xdd   : > { %v212_v29 = vpop.trf.xlu0 }
  0xde   : > { %228 = vst [vmem:[%s663_s18 + $0x68] sm:$0xff] %v212_v29 }
  0xe1   : > { %v213_v30 = vpop.trf.xlu0 }
  0xe2   : > { %229 = vst [vmem:[%s663_s18 + $0x70] sm:$0xff] %v213_v30 }
  0xe5   : > { %v214_v31 = vpop.trf.xlu0 }
  0xe6   : > { %230 = vst [vmem:[%s663_s18 + $0x78] sm:$0xff] %v214_v31 }
  0xe7   : > { %464 = shalt.err (!%p461_p6)
}
  0xe8   : > { %s465_s4 = scalar_lea.hbm %s685_s28, 2048  ;;  %s469_s13 = scalar_lea.hbm %s737_s1, 4096 }
  0xe9   : > { %p466_p7 = scmp.ne.s32.totalorder %s685_s28, %s465_s4  ;;  %p470_p13 = scmp.lt.s32.totalorder %s685_s28, %s737_s1 }
  0xea   : > { %p471_p2 = scmp.lt.s32.totalorder %s469_s13, %s465_s4 }
  0xeb   : > { %p467_p10 = pnand %p466_p7, %p600_p9 }
  0xec   : > { %p472_p8 = por %p471_p2, %p470_p13 }
  0xed   : > { %p468_p4 = pneg %p467_p10 }
  0xef   : > { %p473_p12 = pnand %p472_p8, %p468_p4 }
  0xf1   : > { %476 = shalt.err (!%p473_p12)
}
  0xf2   : > { %s537_s22 = smov 128   ;;  %s538_s23 = smov 8  }
  0xf3   : > { %359 = dma.vmem_to_hbm [thread:$0]  (%p600_p9), %s687_s25, 2048, %s685_s28, %s232_s29, %s537_s22, %s537_s22, %s538_s23  }
  0xf4 PF: > { %s263_s18 = sand.u32 1, %s511_s6   ;;  %p743_p0 = scmp.ge.s32.totalorder %s531_s11, 2 }
  0xf5   : > { %s264_s24 = scalar_lea.sflag [#allocation4], %s263_s18 }
  0xf6   : > { %p366_p1 = pnand %p743_p0, %p607_p11 }
  0xf8   : > { %p367_p3 = pneg %p366_p1 }
  0xfa   : > { %506 = dma.done.wait (%p367_p3), %s264_s24, 2048  }
  0xfb   : > { %508 = vsyncadd (%p367_p3), %s264_s24, 4294965248  ;;  %s17_s11 = sadd.s32 1, %s531_s11   ;;  %s744_s6 = smov %s515_s7 }
  0xfc   : > { %p14_p5 = scmp.ge.s32.totalorder %s17_s11, 4   ;;  %s745_s7 = smov %s519_s8 }
  0xfd   : > { %s746_s8 = smov %s605_s20  ;;  %s747_s9 = smov %s527_s10 }
  0xfe   : > { %s748_s10 = smov %s750_s14  ;;  %16 = sbr.rel (!%p14_p5) target bundleno = 6 (0x6), region = 69 }
 0x103   :  { %269 = vsyncpa [#allocation3], 1 }
 0x104   :  { %271 = vsyncpa [#allocation3 + $0x1], 1 }
 0x105   :  { %272 = vsyncpa [#allocation4], 1 }
 0x106   :  { %274 = vsyncpa [#allocation4 + $0x1], 1 }

</bundles_post_ra>
